<compile_context>
chip_gen: v7x
topology: tpu7x:2x2x1
jax: 0.10.0
libtpu: 0.0.40
codegen_flags: <defaults>
</compile_context>

<pallas_src>
import jax
import jax.numpy as jnp
from jax.experimental import pallas as pl
from jax.experimental.pallas import tpu as pltpu

_TARGET_BLOCK_BYTES = 2 << 20   # ~2 MiB per buffer per stream (in + out, double-buffered
                                # => ~8 MiB VMEM; safe on v5e/v6e/v7x scoped defaults)
_VMEM_LIMIT_BYTES = 32 << 20    # explicit headroom, within physical VMEM on all gens


def _pact_quant_kernel(params_ref, x_ref, o_ref):
    """params_ref: SMEM (3,) f32 = [clip_val, scale, inv_scale] of the selected branch.
       x_ref / o_ref: (block_rows, lane) tiles in the activation's native dtype."""
    clip_val = params_ref[0]
    scale = params_ref[1]
    inv_scale = params_ref[2]   # precomputed 1/scale -> multiply instead of divide

    # Math in f32 even for bf16 I/O (floor(scale*y) at 8-bit levels exceeds bf16 mantissa).
    x = x_ref[...].astype(jnp.float32)
    y = jnp.clip(x, jnp.float32(0.0), clip_val)        # clamp(x, 0, clip); NaN propagates
    q = jnp.floor(y * scale) * inv_scale               # linear_quantize + linear_dequantize

    # torch.nan_to_num: for finite positive clip_val, floor(scale*y) ∈ [0, 2**bits-1], so
    # +/-inf can never arise — only the NaN->0 mapping is live work.
    q = jnp.where(jnp.isnan(q), jnp.float32(0.0), q)

    o_ref[...] = q.astype(o_ref.dtype)


def quant_pact_activ(x, alpha_activ, clip_vals, bits):
    """Pallas implementation of QuantPaCTActiv.forward.

    x           : activation tensor of any shape (e.g. NCHW), float dtype
    alpha_activ : (len(bits),) f32 branch-selection logits (module parameter)
    clip_vals   : (len(bits),) f32 per-branch clip values (PaCT clip parameters)
    bits        : int or list[int] of branch bit-widths (static)
    """
    if isinstance(bits, int):
        bits = [bits]
    assert alpha_activ.shape[0] == len(bits) and clip_vals.shape[0] == len(bits)

    # --- branch selection + scalar setup (hoisted out of the hot elementwise path) ---
    n_levels = jnp.asarray([float(2 ** b - 1) for b in bits], dtype=jnp.float32)
    idx = jnp.argmax(alpha_activ)                 # first-max wins, same as torch.argmax
    n = n_levels[idx]
    clip_val = clip_vals[idx].astype(jnp.float32)
    scale = n / clip_val                          # asymmetric_linear_quantization_scale_factor
    inv_scale = jnp.float32(1.0) / scale
    params = jnp.stack([clip_val, scale, inv_scale]).astype(jnp.float32)

    orig_shape = x.shape
    orig_dtype = x.dtype
    total = int(x.size)
    itemsize = jnp.dtype(orig_dtype).itemsize
    sub = {4: 8, 2: 16, 1: 32}.get(itemsize, 8)   # sublane multiple for this dtype

    # --- lane-dense tiling in native dtype ---
    # Pick the widest lane count that divides the flat size so the common case needs no
    # pad and no output slice (a reshape of a contiguous array is free).
    lane = next((c for c in (512, 256, 128) if total % c == 0), 128)
    rows = -(-total // lane)
    padded_total = rows * lane

    x_flat = x.reshape(-1)
    if padded_total != total:
        # TODO(synk): rare unaligned path (flat size not a multiple of 128) still costs one
        #             pad + one slice HBM pass; aligned shapes take the copy-free path.
        x_flat = jnp.pad(x_flat, (0, padded_total - total))
    x2d = x_flat.reshape(rows, lane)

    # --- block sizing: ~2 MiB per buffer; >= 2 grid steps when the layout allows so both
    #     v7x TensorCores get work; partial last block handled by Pallas masking ---
    max_block_rows = max(sub, (_TARGET_BLOCK_BYTES // (lane * itemsize)) // sub * sub)
    if rows <= max_block_rows:
        half = ((-(-rows // 2)) + sub - 1) // sub * sub   # cdiv(rows,2) rounded up to sublane
        block_rows = half if half < rows else rows        # rows: full-extent block exemption
    else:
        block_rows = max_block_rows
    grid_rows = -(-rows // block_rows)

    out2d = pl.pallas_call(
        _pact_quant_kernel,
        out_shape=jax.ShapeDtypeStruct((rows, lane), orig_dtype),
        grid=(grid_rows,),
        in_specs=[
            pl.BlockSpec(memory_space=pltpu.MemorySpace.SMEM),      # selected-branch scalars
            pl.BlockSpec((block_rows, lane), lambda i: (i, 0)),     # activation tile
        ],
        out_specs=pl.BlockSpec((block_rows, lane), lambda i: (i, 0)),
        compiler_params=pltpu.CompilerParams(
            dimension_semantics=("parallel",),                      # both TCs on v7x
            vmem_limit_bytes=_VMEM_LIMIT_BYTES),
        cost_estimate=pl.CostEstimate(
            flops=7 * total, transcendentals=0,
            bytes_accessed=2 * total * itemsize),
    )(params, x2d)

    out_flat = out2d.reshape(-1)
    if padded_total != total:
        out_flat = out_flat[:total]
    return out_flat.reshape(orig_shape)


def _reference(x, alpha_activ, clip_vals, bits):
    """Pure-JAX mirror of the PyTorch forward (all branches + one-hot sum), f32 math."""
    if isinstance(bits, int):
        bits = [bits]
    xf = x.astype(jnp.float32)
    sw = jax.nn.one_hot(jnp.argmax(alpha_activ), len(bits), dtype=jnp.float32)
    acc = jnp.zeros(xf.shape, dtype=jnp.float32)
    for i, b in enumerate(bits):
        clip_val = clip_vals[i]
        scale = (2.0 ** b - 1.0) / clip_val
        out = jnp.clip(xf, 0.0, clip_val)
        out = jnp.floor(scale * out)
        out = out / scale
        out = jnp.nan_to_num(out)
        acc = acc + out * sw[i]
    return acc


if __name__ == "__main__":
    key = jax.random.PRNGKey(0)
    k1, k2, k3, k4 = jax.random.split(key, 4)

    bits = [2, 4, 8]

    # --- test 1: small NCHW activation, module-default parameters (selects bits[0]) ---
    x = 3.0 * jax.random.normal(k1, (2, 4, 16, 16), dtype=jnp.float32)
    x = x.at[0, 0, 0, 0].set(jnp.nan)                       # exercise nan_to_num
    alpha_activ = jnp.full((len(bits),), 0.01, dtype=jnp.float32)   # module init
    clip_vals = jnp.full((len(bits),), 6.0, dtype=jnp.float32)      # init_act_clip_val=6

    out = jax.block_until_ready(quant_pact_activ(x, alpha_activ, clip_vals, bits))
    ref = _reference(x, alpha_activ, clip_vals, bits)
    assert out.shape == x.shape and out.dtype == x.dtype
    assert jnp.allclose(out, ref, atol=1e-5, rtol=1e-5), "mismatch vs reference (test 1)"

    # --- test 2: larger activation (multi-block grid), non-default alpha selects bits[1] ---
    x2 = 4.0 * jax.random.normal(k2, (4, 16, 64, 128), dtype=jnp.float32)
    alpha2 = jnp.asarray([0.01, 0.30, 0.05], dtype=jnp.float32)
    clips2 = jnp.asarray([6.0, 5.0, 4.0], dtype=jnp.float32)

    out2 = jax.block_until_ready(quant_pact_activ(x2, alpha2, clips2, bits))
    ref2 = _reference(x2, alpha2, clips2, bits)
    assert out2.shape == x2.shape
    assert jnp.allclose(out2, ref2, atol=1e-5, rtol=1e-5), "mismatch vs reference (test 2)"

    # --- test 3: bf16 activation exercises native-dtype I/O with f32 in-kernel math ---
    x3 = (3.0 * jax.random.normal(k3, (2, 8, 16, 16), dtype=jnp.float32)).astype(jnp.bfloat16)
    out3 = jax.block_until_ready(quant_pact_activ(x3, alpha2, clips2, bits))
    ref3 = _reference(x3, alpha2, clips2, bits)
    assert out3.shape == x3.shape and out3.dtype == jnp.bfloat16
    assert jnp.allclose(out3.astype(jnp.float32), ref3, atol=5e-2, rtol=2e-2), \
        "mismatch vs reference (test 3, bf16)"

    # --- test 4: non-128-multiple flat size exercises the (rare) pad/slice fallback ---
    x4 = 3.0 * jax.random.normal(k4, (3, 5, 7), dtype=jnp.float32)
    out4 = jax.block_until_ready(quant_pact_activ(x4, alpha_activ, clip_vals, bits))
    ref4 = _reference(x4, alpha_activ, clip_vals, bits)
    assert out4.shape == x4.shape
    assert jnp.allclose(out4, ref4, atol=1e-5, rtol=1e-5), "mismatch vs reference (test 4)"

    print("KERNEL_OK")
</pallas_src>

<mosaic_0001>
module attributes {stable_mosaic.version = 11 : i64} {
  func.func @_pact_quant_kernel(%arg0: i32, %arg1: memref<3xf32, #tpu.memory_space<smem>>, %arg2: memref<4x512xf32, #tpu.memory_space<vmem>>, %arg3: memref<4x512xf32, #tpu.memory_space<vmem>>) attributes {dimension_semantics = [#tpu.dimension_semantics<parallel>], iteration_bounds = array<i64: 1>, scalar_prefetch = 0 : i64, scratch_operands = 0 : i64, tpu.core_type = #tpu.core_type<tc>, window_params = [{transform_indices = @transform_0, window_bounds = array<i64: 3>}, {transform_indices = @transform_1, window_bounds = array<i64: 4, 512>}, {transform_indices = @transform_2, window_bounds = array<i64: 4, 512>}]} {
    %c0 = arith.constant 0 : index
    %0 = memref.load %arg1[%c0] : memref<3xf32, #tpu.memory_space<smem>>
    %c1 = arith.constant 1 : index
    %1 = memref.load %arg1[%c1] : memref<3xf32, #tpu.memory_space<smem>>
    %c2 = arith.constant 2 : index
    %2 = memref.load %arg1[%c2] : memref<3xf32, #tpu.memory_space<smem>>
    %c0_0 = arith.constant 0 : index
    %c0_1 = arith.constant 0 : index
    %3 = vector.load %arg2[%c0_0, %c0_1] : memref<4x512xf32, #tpu.memory_space<vmem>>, vector<4x512xf32>
    %cst = arith.constant 0.000000e+00 : f32
    %4 = vector.broadcast %cst : f32 to vector<4x512xf32>
    %5 = arith.maximumf %4, %3 : vector<4x512xf32>
    %6 = vector.broadcast %0 : f32 to vector<4x512xf32>
    %7 = arith.minimumf %6, %5 : vector<4x512xf32>
    %8 = vector.broadcast %1 : f32 to vector<4x512xf32>
    %9 = arith.mulf %7, %8 : vector<4x512xf32>
    %10 = math.floor %9 : vector<4x512xf32>
    %11 = vector.broadcast %2 : f32 to vector<4x512xf32>
    %12 = arith.mulf %10, %11 : vector<4x512xf32>
    %13 = arith.cmpf one, %12, %12 : vector<4x512xf32>
    %cst_2 = arith.constant 0.000000e+00 : f32
    %14 = vector.broadcast %cst_2 : f32 to vector<4x512xf32>
    %15 = arith.select %13, %14, %12 : vector<4x512xi1>, vector<4x512xf32>
    %c0_3 = arith.constant 0 : index
    %c0_4 = arith.constant 0 : index
    %16 = vector.load %arg3[%c0_3, %c0_4] : memref<4x512xf32, #tpu.memory_space<vmem>>, vector<4x512xf32>
    tpu.vector_store %arg3[%c0_3, %c0_4], %15 {strides = array<i32>} : memref<4x512xf32, #tpu.memory_space<vmem>>, vector<4x512xf32>,
    return
  }
  func.func @transform_0(%arg0: i32) -> i32 {
    %c0_i32 = arith.constant 0 : i32
    %c0_i32_0 = arith.constant 0 : i32
    return %c0_i32 : i32
  }
  func.func @transform_1(%arg0: i32) -> (i32, i32) {
    %c0_i32 = arith.constant 0 : i32
    %c0_i32_0 = arith.constant 0 : i32
    return %arg0, %c0_i32 : i32, i32
  }
  func.func @transform_2(%arg0: i32) -> (i32, i32) {
    %c0_i32 = arith.constant 0 : i32
    %c0_i32_0 = arith.constant 0 : i32
    return %arg0, %c0_i32 : i32, i32
  }
}

</mosaic_0001>

<bundles_post_ra>
// kernel: tpu_custom_call.1
= control target key start
LH: loop header
LB: loop body
LE: loop exit
PB: predicated region body
PF: predicated region fallthrough
CT: control target
= control target key end

     0   :  { %7 = vsyncpa [#allocation5], 0  ;;  %s194_s0 = inlined_call_operand.hbm [shape: f32[3], index: 0, kind: input, shape index: {}]   ;;  %s195_s1 = inlined_call_operand.hbm [shape: f32[4,512], index: 1, kind: input, shape index: {}]   ;;  %s196_s2 = inlined_call_operand.hbm [shape: f32[4,512], index: 2, kind: output, shape index: {}]  }
   0x1   :  { %8 = vsyncpa [#allocation3], 0 }
   0x2   :  { %9 = vsyncpa [#allocation4], 0  ;;  %s80_s11 = scalar_lea.hbm %s194_s0, 16 }
   0x3   :  { %p81_p0 = scmp.ne.s32.totalorder %s194_s0, %s80_s11  ;;  %p84_p1 = scmp.lt.u32.totalorder %s80_s11, %s194_s0 }
   0x5   :  { %p86_p2 = pnand %p84_p1, %p81_p0 }
   0x7   :  { %89 = shalt.err (!%p86_p2)
}
   0x8   :  { %s140_s16 = smov [#allocation2]   ;;  %s141_s19 = smov [#allocation6]  }
   0x9   :  { %17 = dma.hbm_to_smem %s194_s0, 16, %s140_s16, [#allocation5]  }
   0xa   :  { %s24_s20 = sshll.u32 %s141_s19, 4  ;;  %s90_s23 = scalar_lea.hbm %s195_s1, 256  ;;  %s25_s20 = int_to_ptr.vmem [resolvable:$true] %s24_s20 }
   0xb   :  { %p91_p3 = scmp.ne.s32.totalorder %s195_s1, %s90_s23  ;;  %p94_p4 = scmp.lt.u32.totalorder %s90_s23, %s195_s1 }
   0xd   :  { %p96_p5 = pnand %p94_p4, %p91_p3 }
   0xf   :  { %99 = shalt.err (!%p96_p5)
}
  0x10   :  { %s100_s28 = scalar_lea.vmem %s25_s20, 256  ;;  %p105_p7 = scmp.lt.s32.totalorder %s25_s20, %s25_s20 }
  0x11   :  { %p101_p6 = scmp.ne.s32.totalorder %s25_s20, %s100_s28  ;;  %p106_p8 = scmp.lt.s32.totalorder %s100_s28, %s100_s28 }
  0x13   :  { %p107_p9 = por %p106_p8, %p105_p7 }
  0x15   :  { %p108_p10 = pnand %p107_p9, %p101_p6 }
  0x17   :  { %111 = shalt.err (!%p108_p10)
}
  0x18   :  { %27 = dma.hbm_to_vmem [thread:$0]  %s195_s1, 256, %s25_s20, [#allocation3]  }
  0x19   :  { %134 = dma.done.wait [#allocation5], 16  }
  0x1a   :  { %135 = vsyncadd [#allocation5], 4294967280 }
  0x1b   :  { %136 = dma.done.wait [#allocation3], 256  }
  0x1c   :  { %137 = vsyncadd [#allocation3], 4294967040 }
  0x1d   :  { %34 = sfence }
  0x1e   :  { %s35_s30 = sld [smem:[#allocation2]]  ;;  %s75_s3 = sld [smem:[#allocation2 + $0x1]]  ;;  %v38_v0 = vld [vmem:[#allocation6] sm:$0xff]  ;;  %v39_v1 = vld [vmem:[#allocation6 + $0x8] sm:$0xff] }
  0x1f   :  { %s76_s4 = sld [smem:[#allocation2 + $0x2]]  ;;  %v40_v2 = vmax.f32 %v38_v0, 0.0  ;;  %v41_v3 = vmax.f32 %v39_v1, 0.0  ;;  %s142_s1 = smov [#allocation7]  }
  0x20   :  { %s65_s5 = sshll.u32 %s142_s1, 4  ;;  %s66_s5 = int_to_ptr.vmem [resolvable:$true] %s65_s5 }
  0x21   :  { %s112_s6 = scalar_lea.vmem %s66_s5, 256  ;;  %p117_p12 = scmp.lt.s32.totalorder %s66_s5, %s66_s5 }
  0x22   :  { %p113_p11 = scmp.ne.s32.totalorder %s66_s5, %s112_s6  ;;  %p118_p13 = scmp.lt.s32.totalorder %s112_s6, %s112_s6 }
  0x24   :  { %v42_v4 = vstv %s35_s30  ;;  %v45_v5 = vstv %s75_s3  ;;  %p119_p0 = por %p118_p13, %p117_p12 }
  0x25   :  { %v43_v6 = vmin.f32 %v42_v4, %v40_v2  ;;  %v44_v7 = vmin.f32 %v42_v4, %v41_v3  ;;  %v50_v10 = vstv %s76_s4 }
  0x26   :  { %p120_p1 = pnand %p119_p0, %p113_p11 }
  0x27   :  { %v46_v8 = vmul.f32 %v45_v5, %v43_v6  ;;  %v47_v9 = vmul.f32 %v45_v5, %v44_v7 }
  0x29   :  { %v48_v11 = vfloor.f32 %v46_v8  ;;  %v49_v12 = vfloor.f32 %v47_v9 }
  0x2b   :  { %v51_v13 = vmul.f32 %v50_v10, %v48_v11  ;;  %v52_v14 = vmul.f32 %v50_v10, %v49_v12 }
  0x2d   :  { %vm53_vm0 = vcmp.ne.f32.partialorder %v51_v13, %v51_v13  ;;  %vm54_vm1 = vcmp.ne.f32.partialorder %v52_v14, %v52_v14 }
  0x2e   :  { %v55_v15 = vsel %vm53_vm0, 0.0, %v51_v13  ;;  %v56_v16 = vsel %vm54_vm1, 0.0, %v52_v14 }
  0x2f   :  { %57 = vst [vmem:[#allocation7] sm:$0xff] %v55_v15  ;;  %58 = vst [vmem:[#allocation7 + $0x8] sm:$0xff] %v56_v16 }
  0x30   :  { %123 = shalt.err (!%p120_p1)
}
  0x31   :  { %s124_s9 = scalar_lea.hbm %s196_s2, 256 }
  0x32   :  { %p125_p2 = scmp.ne.s32.totalorder %s196_s2, %s124_s9  ;;  %p128_p3 = scmp.lt.u32.totalorder %s124_s9, %s196_s2 }
  0x34   :  { %p130_p4 = pnand %p128_p3, %p125_p2 }
  0x36   :  { %133 = shalt.err (!%p130_p4)
}
  0x37   :  { %68 = dma.vmem_to_hbm [thread:$0]  %s66_s5, 256, %s196_s2, [#allocation4]  }
  0x38   :  { %138 = dma.done.wait [#allocation4], 256  }
  0x39   :  { %139 = vsyncadd [#allocation4], 4294967040 }
  0x3a   :  { %72 = vsyncpa [#allocation3], 1 }
  0x3b   :  { %73 = vsyncpa [#allocation4], 1 }
  0x3c   :  { %74 = vsyncpa [#allocation5], 1 }

</bundles_post_ra>
